<compile_context>
chip_gen: v7x
topology: tpu7x:2x2x1
jax: 0.10.0
libtpu: 0.0.40
codegen_flags: <defaults>
</compile_context>

<pallas_src>
import jax
import jax.numpy as jnp
from jax import lax
from jax.experimental import pallas as pl
from jax.experimental.pallas import tpu as pltpu


# Whole-array-in-VMEM spec (all operands here are tiny; no grid / auto-pipelining needed).
_VMEM = pl.BlockSpec(memory_space=pltpu.MemorySpace.VMEM)


def _matmul_bias_kernel(x_ref, w_ref, b_ref, o_ref):
    """o = x @ w + b : one MXU matmul. Used for the hoisted input projection (K1)
    and the hoisted final linear layer (K3)."""
    o_ref[...] = (jnp.dot(x_ref[...], w_ref[...], preferred_element_type=jnp.float32)
                  + b_ref[...]).astype(o_ref.dtype)


def _matmul_bias(x, w, b):
    m, n = x.shape[0], w.shape[1]
    return pl.pallas_call(
        _matmul_bias_kernel,
        out_shape=jax.ShapeDtypeStruct((m, n), jnp.float32),
        in_specs=[_VMEM, _VMEM, _VMEM],
        out_specs=_VMEM,
    )(x, w, b)


def _rnn_recurrence_kernel(pre_ref, h0_ref, whh_ref, hs_ref, hn_ref):
    """Serial tanh recurrence only: h_t = tanh(pre_t + h_{t-1} @ W_hh^T).

    pre_ref : (S, B, H) pre-activations (input projection already applied, K1)
    hs_ref  : (S, B, H) all hidden states (consumed by the batched FC matmul, K3)
    hn_ref  : (B, H)    final hidden state
    """
    S = pre_ref.shape[0]
    h = h0_ref[...]                                    # carry lives in vregs, no scratch
    whh = whh_ref[...]
    # S is small and static -> fully unrolled at trace time: every index is a static
    # leading-dim index, and the independent hs stores can overlap the dependent
    # h-chain. For long sequences switch to lax.fori_loop(..., unroll=True).
    for t in range(S):
        h = jnp.tanh(pre_ref[t]
                     + jnp.dot(h, whh, preferred_element_type=jnp.float32))
        hs_ref[t] = h
    hn_ref[...] = h


def rnn_forward(tokens, hidden, params):
    """tokens: (B, S) int32 indices; hidden: (n_layers=1, B, H) float32."""
    emb = params["embedding"]                          # (vocab, H)
    B, S = tokens.shape
    H = emb.shape[1]
    O = params["w_fc_t"].shape[1]

    # Embedding lookup (gather), produced directly in time-major flat order: only the
    # tiny (B, S) int token matrix is transposed, never the (S*B, H) float activations.
    # TODO(synk): fuse the gather into K1 via scalar-prefetch / in-kernel DMA gather
    # instead of materializing x in HBM.
    flat_tokens = tokens.T.reshape(-1)                 # (S*B,), row s*B + b
    x2d = jnp.take(emb, flat_tokens, axis=0)           # (S*B, H)

    # K1: hoisted input projection -- one big MXU matmul off the serial critical path.
    pre2d = _matmul_bias(x2d, params["w_ih_t"], params["b_rnn"])   # (S*B, H)
    pre_tm = pre2d.reshape(S, B, H)                    # row-major reshape: free

    # K2: the serial recurrence (single kernel invocation, internal unrolled loop).
    hs_tm, h_n = pl.pallas_call(
        _rnn_recurrence_kernel,
        out_shape=(jax.ShapeDtypeStruct((S, B, H), jnp.float32),
                   jax.ShapeDtypeStruct((B, H), jnp.float32)),
        in_specs=[_VMEM, _VMEM, _VMEM],
        out_specs=(_VMEM, _VMEM),
    )(pre_tm, hidden[0], params["w_hh_t"])

    # TODO(synk): nn.Dropout(0.2) on r_output is identity in eval/inference mode; no RNG applied.

    # K3: hoisted final linear layer -- one big (S*B, H) x (H, O) MXU matmul.
    logits_tm = _matmul_bias(hs_tm.reshape(S * B, H),
                             params["w_fc_t"], params["b_fc"])     # (S*B, O), row s*B+b

    # Reorder to PyTorch's batch_first flatten (row b*S + s). Only the O-wide logits
    # (the smallest tensor in the graph) are reordered by XLA.
    output = jnp.transpose(logits_tm.reshape(S, B, O), (1, 0, 2)).reshape(B * S, O)
    hidden_out = h_n[None]                             # (n_layers=1, B, H)
    return output, hidden_out


def rnn_forward_ref(tokens, hidden, params):
    """Pure-JAX reference (lax.scan) for correctness checking."""
    x = jnp.take(params["embedding"], tokens, axis=0)          # (B, S, H)
    x_tm = jnp.transpose(x, (1, 0, 2))                         # (S, B, H)

    def step(h, x_t):
        h_new = jnp.tanh(x_t @ params["w_ih_t"] + h @ params["w_hh_t"]
                         + params["b_rnn"])
        return h_new, h_new

    h_n, hs = lax.scan(step, hidden[0], x_tm)
    r_out = jnp.transpose(hs, (1, 0, 2))                       # (B, S, H)
    H = r_out.shape[-1]
    out = r_out.reshape(-1, H) @ params["w_fc_t"] + params["b_fc"]
    return out, h_n[None]


def init_params(key, input_size, hidden_size, output_size):
    """Deterministic parameter init matching the PyTorch module's shapes."""
    k = jax.random.split(key, 7)
    scale = 1.0 / jnp.sqrt(hidden_size)
    embedding = jax.random.normal(k[0], (input_size, hidden_size), jnp.float32)
    w_ih = jax.random.uniform(k[1], (hidden_size, input_size), jnp.float32, -scale, scale)
    w_hh = jax.random.uniform(k[2], (hidden_size, hidden_size), jnp.float32, -scale, scale)
    b_ih = jax.random.uniform(k[3], (hidden_size,), jnp.float32, -scale, scale)
    b_hh = jax.random.uniform(k[4], (hidden_size,), jnp.float32, -scale, scale)
    w_fc = jax.random.uniform(k[5], (output_size, hidden_size), jnp.float32, -scale, scale)
    b_fc = jax.random.uniform(k[6], (output_size,), jnp.float32, -scale, scale)
    return {
        "embedding": embedding,
        "w_ih_t": w_ih.T,                            # (input=H, H) so kernel does x @ W
        "w_hh_t": w_hh.T,                            # (H, H)
        "b_rnn": (b_ih + b_hh)[None, :],             # (1, H) combined RNN bias
        "w_fc_t": w_fc.T,                            # (H, O)
        "b_fc": b_fc[None, :],                       # (1, O)
    }


if __name__ == "__main__":
    # Small shapes implied by the module: input_size == hidden_size (see NOTE above).
    batch, seq = 2, 8
    input_size = hidden_size = 32
    output_size = 16
    n_layers = 1

    key = jax.random.PRNGKey(0)
    kp, kt = jax.random.split(key)
    params = init_params(kp, input_size, hidden_size, output_size)

    tokens = jax.random.randint(kt, (batch, seq), 0, input_size, dtype=jnp.int32)
    hidden0 = jnp.zeros((n_layers, batch, hidden_size), jnp.float32)   # init_hidden()

    out, h_n = jax.jit(rnn_forward)(tokens, hidden0, params)
    out = jax.block_until_ready(out)
    h_n = jax.block_until_ready(h_n)

    out_ref, h_ref = rnn_forward_ref(tokens, hidden0, params)
    assert out.shape == (batch * seq, output_size)
    assert h_n.shape == (n_layers, batch, hidden_size)
    assert jnp.allclose(out, out_ref, atol=1e-5, rtol=1e-5)
    assert jnp.allclose(h_n, h_ref, atol=1e-5, rtol=1e-5)

    print("KERNEL_OK")
</pallas_src>

<mosaic_0001>
module attributes {stable_mosaic.version = 11 : i64} {
  func.func @_rnn_recurrence_kernel(%arg0: memref<8x2x32xf32, #tpu.memory_space<vmem>>, %arg1: memref<2x32xf32, #tpu.memory_space<vmem>>, %arg2: memref<32x32xf32, #tpu.memory_space<vmem>>, %arg3: memref<8x2x32xf32, #tpu.memory_space<vmem>>, %arg4: memref<2x32xf32, #tpu.memory_space<vmem>>) attributes {dimension_semantics = [], scalar_prefetch = 0 : i64, scratch_operands = 0 : i64, tpu.core_type = #tpu.core_type<tc>} {
    %c0 = arith.constant 0 : index
    %c0_0 = arith.constant 0 : index
    %0 = vector.load %arg1[%c0, %c0_0] : memref<2x32xf32, #tpu.memory_space<vmem>>, vector<2x32xf32>
    %c0_1 = arith.constant 0 : index
    %c0_2 = arith.constant 0 : index
    %1 = vector.load %arg2[%c0_1, %c0_2] : memref<32x32xf32, #tpu.memory_space<vmem>>, vector<32x32xf32>
    %c0_3 = arith.constant 0 : index
    %c0_4 = arith.constant 0 : index
    %c0_5 = arith.constant 0 : index
    %2 = vector.load %arg0[%c0_3, %c0_4, %c0_5] : memref<8x2x32xf32, #tpu.memory_space<vmem>>, vector<1x2x32xf32>
    %3 = vector.shape_cast %2 : vector<1x2x32xf32> to vector<2x32xf32>
    %cst = arith.constant dense<0.000000e+00> : vector<2x32xf32>
    %4 = tpu.matmul %0, %1, %cst {dimension_numbers = #tpu.dot_dimension_numbers<[1], [0], [0], [1], [0, 0, 1, 1], [], []>} : vector<2x32xf32>, vector<32x32xf32>, vector<2x32xf32> -> vector<2x32xf32>
    %5 = arith.addf %3, %4 : vector<2x32xf32>
    %6 = math.tanh %5 : vector<2x32xf32>
    %c0_6 = arith.constant 0 : index
    %c0_7 = arith.constant 0 : index
    %c0_8 = arith.constant 0 : index
    %7 = vector.load %arg3[%c0_6, %c0_7, %c0_8] : memref<8x2x32xf32, #tpu.memory_space<vmem>>, vector<1x2x32xf32>
    %8 = vector.shape_cast %7 : vector<1x2x32xf32> to vector<2x32xf32>
    %9 = vector.shape_cast %6 : vector<2x32xf32> to vector<1x2x32xf32>
    tpu.vector_store %arg3[%c0_6, %c0_7, %c0_8], %9 {strides = array<i32>} : memref<8x2x32xf32, #tpu.memory_space<vmem>>, vector<1x2x32xf32>,
    %c1 = arith.constant 1 : index
    %c0_9 = arith.constant 0 : index
    %c0_10 = arith.constant 0 : index
    %10 = vector.load %arg0[%c1, %c0_9, %c0_10] : memref<8x2x32xf32, #tpu.memory_space<vmem>>, vector<1x2x32xf32>
    %11 = vector.shape_cast %10 : vector<1x2x32xf32> to vector<2x32xf32>
    %cst_11 = arith.constant dense<0.000000e+00> : vector<2x32xf32>
    %12 = tpu.matmul %6, %1, %cst_11 {dimension_numbers = #tpu.dot_dimension_numbers<[1], [0], [0], [1], [0, 0, 1, 1], [], []>} : vector<2x32xf32>, vector<32x32xf32>, vector<2x32xf32> -> vector<2x32xf32>
    %13 = arith.addf %11, %12 : vector<2x32xf32>
    %14 = math.tanh %13 : vector<2x32xf32>
    %c1_12 = arith.constant 1 : index
    %c0_13 = arith.constant 0 : index
    %c0_14 = arith.constant 0 : index
    %15 = vector.load %arg3[%c1_12, %c0_13, %c0_14] : memref<8x2x32xf32, #tpu.memory_space<vmem>>, vector<1x2x32xf32>
    %16 = vector.shape_cast %15 : vector<1x2x32xf32> to vector<2x32xf32>
    %17 = vector.shape_cast %14 : vector<2x32xf32> to vector<1x2x32xf32>
    tpu.vector_store %arg3[%c1_12, %c0_13, %c0_14], %17 {strides = array<i32>} : memref<8x2x32xf32, #tpu.memory_space<vmem>>, vector<1x2x32xf32>,
    %c2 = arith.constant 2 : index
    %c0_15 = arith.constant 0 : index
    %c0_16 = arith.constant 0 : index
    %18 = vector.load %arg0[%c2, %c0_15, %c0_16] : memref<8x2x32xf32, #tpu.memory_space<vmem>>, vector<1x2x32xf32>
    %19 = vector.shape_cast %18 : vector<1x2x32xf32> to vector<2x32xf32>
    %cst_17 = arith.constant dense<0.000000e+00> : vector<2x32xf32>
    %20 = tpu.matmul %14, %1, %cst_17 {dimension_numbers = #tpu.dot_dimension_numbers<[1], [0], [0], [1], [0, 0, 1, 1], [], []>} : vector<2x32xf32>, vector<32x32xf32>, vector<2x32xf32> -> vector<2x32xf32>
    %21 = arith.addf %19, %20 : vector<2x32xf32>
    %22 = math.tanh %21 : vector<2x32xf32>
    %c2_18 = arith.constant 2 : index
    %c0_19 = arith.constant 0 : index
    %c0_20 = arith.constant 0 : index
    %23 = vector.load %arg3[%c2_18, %c0_19, %c0_20] : memref<8x2x32xf32, #tpu.memory_space<vmem>>, vector<1x2x32xf32>
    %24 = vector.shape_cast %23 : vector<1x2x32xf32> to vector<2x32xf32>
    %25 = vector.shape_cast %22 : vector<2x32xf32> to vector<1x2x32xf32>
    tpu.vector_store %arg3[%c2_18, %c0_19, %c0_20], %25 {strides = array<i32>} : memref<8x2x32xf32, #tpu.memory_space<vmem>>, vector<1x2x32xf32>,
    %c3 = arith.constant 3 : index
    %c0_21 = arith.constant 0 : index
    %c0_22 = arith.constant 0 : index
    %26 = vector.load %arg0[%c3, %c0_21, %c0_22] : memref<8x2x32xf32, #tpu.memory_space<vmem>>, vector<1x2x32xf32>
    %27 = vector.shape_cast %26 : vector<1x2x32xf32> to vector<2x32xf32>
    %cst_23 = arith.constant dense<0.000000e+00> : vector<2x32xf32>
    %28 = tpu.matmul %22, %1, %cst_23 {dimension_numbers = #tpu.dot_dimension_numbers<[1], [0], [0], [1], [0, 0, 1, 1], [], []>} : vector<2x32xf32>, vector<32x32xf32>, vector<2x32xf32> -> vector<2x32xf32>
    %29 = arith.addf %27, %28 : vector<2x32xf32>
    %30 = math.tanh %29 : vector<2x32xf32>
    %c3_24 = arith.constant 3 : index
    %c0_25 = arith.constant 0 : index
    %c0_26 = arith.constant 0 : index
    %31 = vector.load %arg3[%c3_24, %c0_25, %c0_26] : memref<8x2x32xf32, #tpu.memory_space<vmem>>, vector<1x2x32xf32>
    %32 = vector.shape_cast %31 : vector<1x2x32xf32> to vector<2x32xf32>
    %33 = vector.shape_cast %30 : vector<2x32xf32> to vector<1x2x32xf32>
    tpu.vector_store %arg3[%c3_24, %c0_25, %c0_26], %33 {strides = array<i32>} : memref<8x2x32xf32, #tpu.memory_space<vmem>>, vector<1x2x32xf32>,
    %c4 = arith.constant 4 : index
    %c0_27 = arith.constant 0 : index
    %c0_28 = arith.constant 0 : index
    %34 = vector.load %arg0[%c4, %c0_27, %c0_28] : memref<8x2x32xf32, #tpu.memory_space<vmem>>, vector<1x2x32xf32>
    %35 = vector.shape_cast %34 : vector<1x2x32xf32> to vector<2x32xf32>
    %cst_29 = arith.constant dense<0.000000e+00> : vector<2x32xf32>
    %36 = tpu.matmul %30, %1, %cst_29 {dimension_numbers = #tpu.dot_dimension_numbers<[1], [0], [0], [1], [0, 0, 1, 1], [], []>} : vector<2x32xf32>, vector<32x32xf32>, vector<2x32xf32> -> vector<2x32xf32>
    %37 = arith.addf %35, %36 : vector<2x32xf32>
    %38 = math.tanh %37 : vector<2x32xf32>
    %c4_30 = arith.constant 4 : index
    %c0_31 = arith.constant 0 : index
    %c0_32 = arith.constant 0 : index
    %39 = vector.load %arg3[%c4_30, %c0_31, %c0_32] : memref<8x2x32xf32, #tpu.memory_space<vmem>>, vector<1x2x32xf32>
    %40 = vector.shape_cast %39 : vector<1x2x32xf32> to vector<2x32xf32>
    %41 = vector.shape_cast %38 : vector<2x32xf32> to vector<1x2x32xf32>
    tpu.vector_store %arg3[%c4_30, %c0_31, %c0_32], %41 {strides = array<i32>} : memref<8x2x32xf32, #tpu.memory_space<vmem>>, vector<1x2x32xf32>,
    %c5 = arith.constant 5 : index
    %c0_33 = arith.constant 0 : index
    %c0_34 = arith.constant 0 : index
    %42 = vector.load %arg0[%c5, %c0_33, %c0_34] : memref<8x2x32xf32, #tpu.memory_space<vmem>>, vector<1x2x32xf32>
    %43 = vector.shape_cast %42 : vector<1x2x32xf32> to vector<2x32xf32>
    %cst_35 = arith.constant dense<0.000000e+00> : vector<2x32xf32>
    %44 = tpu.matmul %38, %1, %cst_35 {dimension_numbers = #tpu.dot_dimension_numbers<[1], [0], [0], [1], [0, 0, 1, 1], [], []>} : vector<2x32xf32>, vector<32x32xf32>, vector<2x32xf32> -> vector<2x32xf32>
    %45 = arith.addf %43, %44 : vector<2x32xf32>
    %46 = math.tanh %45 : vector<2x32xf32>
    %c5_36 = arith.constant 5 : index
    %c0_37 = arith.constant 0 : index
    %c0_38 = arith.constant 0 : index
    %47 = vector.load %arg3[%c5_36, %c0_37, %c0_38] : memref<8x2x32xf32, #tpu.memory_space<vmem>>, vector<1x2x32xf32>
    %48 = vector.shape_cast %47 : vector<1x2x32xf32> to vector<2x32xf32>
    %49 = vector.shape_cast %46 : vector<2x32xf32> to vector<1x2x32xf32>
    tpu.vector_store %arg3[%c5_36, %c0_37, %c0_38], %49 {strides = array<i32>} : memref<8x2x32xf32, #tpu.memory_space<vmem>>, vector<1x2x32xf32>,
    %c6 = arith.constant 6 : index
    %c0_39 = arith.constant 0 : index
    %c0_40 = arith.constant 0 : index
    %50 = vector.load %arg0[%c6, %c0_39, %c0_40] : memref<8x2x32xf32, #tpu.memory_space<vmem>>, vector<1x2x32xf32>
    %51 = vector.shape_cast %50 : vector<1x2x32xf32> to vector<2x32xf32>
    %cst_41 = arith.constant dense<0.000000e+00> : vector<2x32xf32>
    %52 = tpu.matmul %46, %1, %cst_41 {dimension_numbers = #tpu.dot_dimension_numbers<[1], [0], [0], [1], [0, 0, 1, 1], [], []>} : vector<2x32xf32>, vector<32x32xf32>, vector<2x32xf32> -> vector<2x32xf32>
    %53 = arith.addf %51, %52 : vector<2x32xf32>
    %54 = math.tanh %53 : vector<2x32xf32>
    %c6_42 = arith.constant 6 : index
    %c0_43 = arith.constant 0 : index
    %c0_44 = arith.constant 0 : index
    %55 = vector.load %arg3[%c6_42, %c0_43, %c0_44] : memref<8x2x32xf32, #tpu.memory_space<vmem>>, vector<1x2x32xf32>
    %56 = vector.shape_cast %55 : vector<1x2x32xf32> to vector<2x32xf32>
    %57 = vector.shape_cast %54 : vector<2x32xf32> to vector<1x2x32xf32>
    tpu.vector_store %arg3[%c6_42, %c0_43, %c0_44], %57 {strides = array<i32>} : memref<8x2x32xf32, #tpu.memory_space<vmem>>, vector<1x2x32xf32>,
    %c7 = arith.constant 7 : index
    %c0_45 = arith.constant 0 : index
    %c0_46 = arith.constant 0 : index
    %58 = vector.load %arg0[%c7, %c0_45, %c0_46] : memref<8x2x32xf32, #tpu.memory_space<vmem>>, vector<1x2x32xf32>
    %59 = vector.shape_cast %58 : vector<1x2x32xf32> to vector<2x32xf32>
    %cst_47 = arith.constant dense<0.000000e+00> : vector<2x32xf32>
    %60 = tpu.matmul %54, %1, %cst_47 {dimension_numbers = #tpu.dot_dimension_numbers<[1], [0], [0], [1], [0, 0, 1, 1], [], []>} : vector<2x32xf32>, vector<32x32xf32>, vector<2x32xf32> -> vector<2x32xf32>
    %61 = arith.addf %59, %60 : vector<2x32xf32>
    %62 = math.tanh %61 : vector<2x32xf32>
    %c7_48 = arith.constant 7 : index
    %c0_49 = arith.constant 0 : index
    %c0_50 = arith.constant 0 : index
    %63 = vector.load %arg3[%c7_48, %c0_49, %c0_50] : memref<8x2x32xf32, #tpu.memory_space<vmem>>, vector<1x2x32xf32>
    %64 = vector.shape_cast %63 : vector<1x2x32xf32> to vector<2x32xf32>
    %65 = vector.shape_cast %62 : vector<2x32xf32> to vector<1x2x32xf32>
    tpu.vector_store %arg3[%c7_48, %c0_49, %c0_50], %65 {strides = array<i32>} : memref<8x2x32xf32, #tpu.memory_space<vmem>>, vector<1x2x32xf32>,
    %c0_51 = arith.constant 0 : index
    %c0_52 = arith.constant 0 : index
    %66 = vector.load %arg4[%c0_51, %c0_52] : memref<2x32xf32, #tpu.memory_space<vmem>>, vector<2x32xf32>
    tpu.vector_store %arg4[%c0_51, %c0_52], %62 {strides = array<i32>} : memref<2x32xf32, #tpu.memory_space<vmem>>, vector<2x32xf32>,
    return
  }
}

module attributes {stable_mosaic.version = 11 : i64} {
  func.func @_matmul_bias_kernel(%arg0: memref<16x32xf32, #tpu.memory_space<vmem>>, %arg1: memref<32x32xf32, #tpu.memory_space<vmem>>, %arg2: memref<1x32xf32, #tpu.memory_space<vmem>>, %arg3: memref<16x32xf32, #tpu.memory_space<vmem>>) attributes {dimension_semantics = [], scalar_prefetch = 0 : i64, scratch_operands = 0 : i64, tpu.core_type = #tpu.core_type<tc>} {
    %c0 = arith.constant 0 : index
    %c0_0 = arith.constant 0 : index
    %0 = vector.load %arg0[%c0, %c0_0] : memref<16x32xf32, #tpu.memory_space<vmem>>, vector<16x32xf32>
    %c0_1 = arith.constant 0 : index
    %c0_2 = arith.constant 0 : index
    %1 = vector.load %arg1[%c0_1, %c0_2] : memref<32x32xf32, #tpu.memory_space<vmem>>, vector<32x32xf32>
    %cst = arith.constant dense<0.000000e+00> : vector<16x32xf32>
    %2 = tpu.matmul %0, %1, %cst {dimension_numbers = #tpu.dot_dimension_numbers<[1], [0], [0], [1], [0, 0, 1, 1], [], []>} : vector<16x32xf32>, vector<32x32xf32>, vector<16x32xf32> -> vector<16x32xf32>
    %c0_3 = arith.constant 0 : index
    %c0_4 = arith.constant 0 : index
    %3 = vector.load %arg2[%c0_3, %c0_4] : memref<1x32xf32, #tpu.memory_space<vmem>>, vector<1x32xf32>
    %4 = vector.broadcast %3 : vector<1x32xf32> to vector<16x32xf32>
    %5 = arith.addf %2, %4 : vector<16x32xf32>
    %c0_5 = arith.constant 0 : index
    %c0_6 = arith.constant 0 : index
    %6 = vector.load %arg3[%c0_5, %c0_6] : memref<16x32xf32, #tpu.memory_space<vmem>>, vector<16x32xf32>
    tpu.vector_store %arg3[%c0_5, %c0_6], %5 {strides = array<i32>} : memref<16x32xf32, #tpu.memory_space<vmem>>, vector<16x32xf32>,
    return
  }
}

module attributes {stable_mosaic.version = 11 : i64} {
  func.func @_matmul_bias_kernel(%arg0: memref<16x32xf32, #tpu.memory_space<vmem>>, %arg1: memref<32x16xf32, #tpu.memory_space<vmem>>, %arg2: memref<1x16xf32, #tpu.memory_space<vmem>>, %arg3: memref<16x16xf32, #tpu.memory_space<vmem>>) attributes {dimension_semantics = [], scalar_prefetch = 0 : i64, scratch_operands = 0 : i64, tpu.core_type = #tpu.core_type<tc>} {
    %c0 = arith.constant 0 : index
    %c0_0 = arith.constant 0 : index
    %0 = vector.load %arg0[%c0, %c0_0] : memref<16x32xf32, #tpu.memory_space<vmem>>, vector<16x32xf32>
    %c0_1 = arith.constant 0 : index
    %c0_2 = arith.constant 0 : index
    %1 = vector.load %arg1[%c0_1, %c0_2] : memref<32x16xf32, #tpu.memory_space<vmem>>, vector<32x16xf32>
    %cst = arith.constant dense<0.000000e+00> : vector<16x16xf32>
    %2 = tpu.matmul %0, %1, %cst {dimension_numbers = #tpu.dot_dimension_numbers<[1], [0], [0], [1], [0, 0, 1, 1], [], []>} : vector<16x32xf32>, vector<32x16xf32>, vector<16x16xf32> -> vector<16x16xf32>
    %c0_3 = arith.constant 0 : index
    %c0_4 = arith.constant 0 : index
    %3 = vector.load %arg2[%c0_3, %c0_4] : memref<1x16xf32, #tpu.memory_space<vmem>>, vector<1x16xf32>
    %4 = vector.broadcast %3 : vector<1x16xf32> to vector<16x16xf32>
    %5 = arith.addf %2, %4 : vector<16x16xf32>
    %c0_5 = arith.constant 0 : index
    %c0_6 = arith.constant 0 : index
    %6 = vector.load %arg3[%c0_5, %c0_6] : memref<16x16xf32, #tpu.memory_space<vmem>>, vector<16x16xf32>
    tpu.vector_store %arg3[%c0_5, %c0_6], %5 {strides = array<i32>} : memref<16x16xf32, #tpu.memory_space<vmem>>, vector<16x16xf32>,
    return
  }
}

</mosaic_0001>

<bundles_post_ra>
// kernel: rnn_forward.3
= control target key start
LH: loop header
LB: loop body
LE: loop exit
PB: predicated region body
PF: predicated region fallthrough
CT: control target
= control target key end

     0   :  { %vm27_vm0 = vcmask 261120   ;;  %s194_s1 = inlined_call_operand.vmem [shape: f32[32,32], index: 1, kind: input, shape index: {}]   ;;  %s195_s0 = inlined_call_operand.vmem [shape: f32[16,32], index: 0, kind: input, shape index: {}]   ;;  %s196_s2 = inlined_call_operand.vmem [shape: f32[1,32], index: 2, kind: input, shape index: {}]   ;;  %s197_s3 = inlined_call_operand.vmem [shape: f32[16,32], index: 3, kind: output, shape index: {}]  }
   0x1   :  { %v16_v0 = vld [vmem:[%s194_s1] sm:$0xff]  ;;  %v17_v1 = vld [vmem:[%s194_s1 + $0x8] sm:$0xff]  ;;  %v18_v2 = vld [vmem:[%s194_s1 + $0x10] sm:$0xff] }
   0x2   :  { %v135_v3 = vpack.c.bf16 %v17_v1, %v16_v0  ;;  %v19_v4 = vld [vmem:[%s194_s1 + $0x18] sm:$0xff]  ;;  %v14_v5 = vld [vmem:[%s195_s0] sm:$0xff]  ;;  %v15_v7 = vld [vmem:[%s195_s0 + $0x8] sm:$0xff] }
   0x3   :  { %v139_v6 = vpack.c.bf16 %v19_v4, %v18_v2  ;;  %132 = vmatprep.mubr.msk.f32.mxu0 %vm27_vm0, %v14_v5  ;;  %v115_v8 = vld [vmem:[%s196_s2] ss:$0 sm:$0xff] }
   0x4   :  { %136 = vmatprep.subr.bf16.mxu0 %v135_v3 }
   0x5   :  { %138 = vmatpush3.bf16.msra.mxu0 %v135_v3 }
   0x6   :  { %140 = vmatprep.subr.bf16.mxu0 %v139_v6 }
   0x9   :  { %142 = vmatpush3.bf16.msra.mxu0 %v139_v6 }
   0xc   :  { %133 = vmatmul.mubr.msk.f32.vlgmr.msra.gmra.mrb[0].mxu0 %vm27_vm0, %v15_v7 }
  0xdf   :  { %v134_v9 = vpop.f32.mrb[0].mxu0 }
  0xe0   :  { %v106_v10 = vadd.f32 %v134_v9, %v115_v8  ;;  %v100_v11 = vpop.f32.mrb[1].mxu0 }
  0xe1   :  { %v101_v12 = vadd.f32 %v115_v8, %v100_v11 }
  0xe2   :  { %110 = vst.msk [vmem:[%s197_s3 + $0x8] sm:$0xff] %vm27_vm0, %v106_v10 }
  0xe3   :  { %109 = vst.msk [vmem:[%s197_s3] sm:$0xff] %vm27_vm0, %v101_v12 }

// kernel: rnn_forward.5
= control target key start
LH: loop header
LB: loop body
LE: loop exit
PB: predicated region body
PF: predicated region fallthrough
CT: control target
= control target key end

     0   :  { %vm27_vm0 = vcmask 261120   ;;  %vm109_vm1 = vcmask 130048   ;;  %s191_s1 = inlined_call_operand.vmem [shape: f32[32,16], index: 1, kind: input, shape index: {}]   ;;  %s192_s0 = inlined_call_operand.vmem [shape: f32[16,32], index: 0, kind: input, shape index: {}]   ;;  %s193_s2 = inlined_call_operand.vmem [shape: f32[1,16], index: 2, kind: input, shape index: {}]   ;;  %s194_s3 = inlined_call_operand.vmem [shape: f32[16,16], index: 3, kind: output, shape index: {}]  }
   0x1   :  { %v16_v0 = vld [vmem:[%s191_s1] sm:$0xff]  ;;  %v17_v1 = vld [vmem:[%s191_s1 + $0x8] sm:$0xff]  ;;  %v18_v2 = vld [vmem:[%s191_s1 + $0x10] sm:$0xff] }
   0x2   :  { %v136_v3 = vpack.c.bf16 %v17_v1, %v16_v0  ;;  %v19_v4 = vld [vmem:[%s191_s1 + $0x18] sm:$0xff]  ;;  %v14_v5 = vld [vmem:[%s192_s0] sm:$0xff]  ;;  %v15_v7 = vld [vmem:[%s192_s0 + $0x8] sm:$0xff] }
   0x3   :  { %v140_v6 = vpack.c.bf16 %v19_v4, %v18_v2  ;;  %133 = vmatprep.mubr.msk.f32.mxu0 %vm27_vm0, %v14_v5  ;;  %v116_v8 = vld [vmem:[%s193_s2] ss:$0 sm:$0xff] }
   0x4   :  { %137 = vmatprep.subr.bf16.mxu0 %v136_v3 }
   0x5   :  { %139 = vmatpush3.bf16.msra.mxu0 %v136_v3 }
   0x6   :  { %141 = vmatprep.subr.bf16.mxu0 %v140_v6 }
   0x9   :  { %143 = vmatpush3.bf16.msra.mxu0 %v140_v6 }
   0xc   :  { %134 = vmatmul.mubr.msk.f32.vlgmr.msra.gmra.mrb[0].mxu0 %vm27_vm0, %v15_v7 }
  0xdf   :  { %v135_v9 = vpop.f32.mrb[0].mxu0 }
  0xe0   :  { %v106_v10 = vadd.f32 %v135_v9, %v116_v8  ;;  %v100_v11 = vpop.f32.mrb[1].mxu0 }
  0xe1   :  { %v101_v12 = vadd.f32 %v116_v8, %v100_v11 }
  0xe2   :  { %111 = vst.msk [vmem:[%s194_s3 + $0x8] sm:$0xff] %vm109_vm1, %v106_v10 }
  0xe3   :  { %110 = vst.msk [vmem:[%s194_s3] sm:$0xff] %vm109_vm1, %v101_v12 }

// kernel: rnn_forward.4
= control target key start
LH: loop header
LB: loop body
LE: loop exit
PB: predicated region body
PF: predicated region fallthrough
CT: control target
= control target key end

     0   :  { %v915_v3 = vmov 0.0|0.0   ;;  %vm916_vm0 = vmmov 0   ;;  %v917_v6 = vmov 0.0   ;;  %s1088_s0 = inlined_call_operand.vmem [shape: f32[8,2,32], index: 0, kind: input, shape index: {}]   ;;  %s1089_s1 = inlined_call_operand.vmem [shape: f32[2,32], index: 1, kind: input, shape index: {}]   ;;  %s1090_s2 = inlined_call_operand.vmem [shape: f32[32,32], index: 2, kind: input, shape index: {}]   ;;  %s1091_s3 = inlined_call_operand.vmem [shape: f32[8,2,32], index: 3, kind: output, shape index: {0}]   ;;  %s1092_s4 = inlined_call_operand.hbm [shape: f32[2,32], index: 4, kind: output, shape index: {1}]  }
   0x1   :  { %v18_v0 = vld [vmem:[%s1090_s2] sm:$0xff]  ;;  %v19_v1 = vld [vmem:[%s1090_s2 + $0x8] sm:$0xff]  ;;  %v20_v2 = vld [vmem:[%s1090_s2 + $0x10] sm:$0xff]  ;;  %823 = vmatprep.subr.bf16.mxu0 %v915_v3  ;;  %743 = vmatprep.mubr.msk.f32.mxu0 %vm916_vm0, %v917_v6 }
   0x2   :  { %v954_v4 = vpack.c.bf16 %v19_v1, %v18_v0  ;;  %v21_v5 = vld [vmem:[%s1090_s2 + $0x18] sm:$0xff]  ;;  %829 = vmatprep.subr.bf16.mxu1 %v915_v3  ;;  %754 = vmatprep.mubr.msk.f32.mxu1 %vm916_vm0, %v917_v6 }
   0x3   :  { %10 = vsyncpa [#allocation3], 0  ;;  %v965_v7 = vpack.c.bf16 %v21_v5, %v20_v2  ;;  %v17_v8 = vld [vmem:[%s1089_s1] sm:$0x3]  ;;  %vm23_vm1 = vcmask 261120   ;;  %vm99_vm2 = vcmask 254976  }
   0x4   :  { %825 = vmatpush3.bf16.msra.mxu0 %v954_v4  ;;  %831 = vmatpush3.bf16.msra.mxu1 %v954_v4  ;;  %v22_v9 = vld [vmem:[%s1088_s0] sm:$0x3]  ;;  %v674_v14 = vld [vmem:[%s1088_s0 + $0x2] sm:$0x3]  ;;  %v677_v19 = vld [vmem:[%s1088_s0 + $0x4] sm:$0x3] }
   0x5   :  { %826 = vmatprep.subr.bf16.mxu0 %v915_v3  ;;  %832 = vmatprep.subr.bf16.mxu1 %v915_v3  ;;  %v680_v24 = vld [vmem:[%s1088_s0 + $0x6] sm:$0x3]  ;;  %v683_v29 = vld [vmem:[%s1088_s0 + $0x8] sm:$0x3]  ;;  %v686_v34 = vld [vmem:[%s1088_s0 + $0xa] sm:$0x3] }
   0x6   :  { %v689_v39 = vld [vmem:[%s1088_s0 + $0xc] sm:$0x3]  ;;  %v692_v44 = vld [vmem:[%s1088_s0 + $0xe] sm:$0x3]  ;;  %s918_s25 = smov [#allocation2]  }
   0x7   :  { %s663_s26 = sshll.u32 %s918_s25, 4  ;;  %s664_s26 = int_to_ptr.vmem [resolvable:$true] %s663_s26 }
   0x8   :  { %828 = vmatpush3.bf16.msra.mxu0 %v965_v7  ;;  %834 = vmatpush3.bf16.msra.mxu1 %v965_v7  ;;  %s891_s29 = scalar_lea.vmem %s664_s26, 32  ;;  %p896_p1 = scmp.lt.s32.totalorder %s664_s26, %s664_s26 }
   0x9   :  { %835 = vmatprep.subr.bf16.mxu0 %v915_v3  ;;  %841 = vmatprep.subr.bf16.mxu1 %v915_v3  ;;  %p892_p0 = scmp.ne.s32.totalorder %s664_s26, %s891_s29  ;;  %p897_p2 = scmp.lt.s32.totalorder %s891_s29, %s891_s29 }
   0xb   :  { %744 = vmatmul.mubr.msk.f32.vlgmr.msra.gmra.mrb[0].mxu0 %vm23_vm1, %v17_v8  ;;  %p898_p3 = por %p897_p2, %p896_p1 }
   0xc   :  { %837 = vmatpush3.bf16.msra.mxu0 %v954_v4  ;;  %765 = vmatprep.mubr.msk.f32.mxu0 %vm916_vm0, %v917_v6 }
   0xd   :  { %838 = vmatprep.subr.bf16.mxu0 %v915_v3  ;;  %p899_p4 = pnand %p898_p3, %p892_p0 }
  0x10   :  { %840 = vmatpush3.bf16.msra.mxu0 %v965_v7 }
  0x11   :  { %847 = vmatprep.subr.bf16.mxu0 %v915_v3 }
  0xde   :  { %v93_v10 = vpop.f32.mrb[0].mxu0 }
  0xdf   :  { %v97_v11 = vadd.f32 %v93_v10, %v22_v9  ;;  %v745_v12 = vpop.f32.mrb[1].mxu0 }
  0xe1   :  { %875 = vtanh.f32 %v97_v11 }
  0xeb   :  { %v876_v13 = vpop.eup %875 }
  0xec   :  { %100 = vst.msk [vmem:[%s1091_s3] sm:$0x3] %vm99_vm2, %v876_v13  ;;  %755 = vmatmul.mubr.msk.f32.vlgmr.msra.gmra.mrb[0].mxu1 %vm23_vm1, %v876_v13 }
  0xed   :  { %843 = vmatpush3.bf16.msra.mxu1 %v954_v4  ;;  %776 = vmatprep.mubr.msk.f32.mxu1 %vm916_vm0, %v917_v6 }
  0xee   :  { %844 = vmatprep.subr.bf16.mxu1 %v915_v3 }
  0xf1   :  { %846 = vmatpush3.bf16.msra.mxu1 %v965_v7 }
  0xf2   :  { %853 = vmatprep.subr.bf16.mxu1 %v915_v3 }
 0x1bf   :  { %v172_v15 = vpop.f32.mrb[0].mxu1 }
 0x1c0   :  { %v176_v16 = vadd.f32 %v674_v14, %v172_v15  ;;  %v756_v17 = vpop.f32.mrb[1].mxu1 }
 0x1c2   :  { %877 = vtanh.f32 %v176_v16 }
 0x1cc   :  { %v878_v18 = vpop.eup %877 }
 0x1cd   :  { %676 = vst.msk [vmem:[%s1091_s3 + $0x2] sm:$0x3] %vm99_vm2, %v878_v18  ;;  %766 = vmatmul.mubr.msk.f32.vlgmr.msra.gmra.mrb[2].mxu0 %vm23_vm1, %v878_v18 }
 0x1ce   :  { %849 = vmatpush3.bf16.msra.mxu0 %v954_v4  ;;  %787 = vmatprep.mubr.msk.f32.mxu0 %vm916_vm0, %v917_v6 }
 0x1cf   :  { %850 = vmatprep.subr.bf16.mxu0 %v915_v3 }
 0x1d2   :  { %852 = vmatpush3.bf16.msra.mxu0 %v965_v7 }
 0x1d3   :  { %859 = vmatprep.subr.bf16.mxu0 %v915_v3 }
 0x2a0   :  { %v251_v20 = vpop.f32.mrb[2].mxu0 }
 0x2a1   :  { %v255_v21 = vadd.f32 %v677_v19, %v251_v20  ;;  %v767_v22 = vpop.f32.mrb[3].mxu0 }
 0x2a3   :  { %879 = vtanh.f32 %v255_v21 }
 0x2ad   :  { %v880_v23 = vpop.eup %879 }
 0x2ae   :  { %679 = vst.msk [vmem:[%s1091_s3 + $0x4] sm:$0x3] %vm99_vm2, %v880_v23  ;;  %777 = vmatmul.mubr.msk.f32.vlgmr.msra.gmra.mrb[2].mxu1 %vm23_vm1, %v880_v23 }
 0x2af   :  { %855 = vmatpush3.bf16.msra.mxu1 %v954_v4  ;;  %798 = vmatprep.mubr.msk.f32.mxu1 %vm916_vm0, %v917_v6 }
 0x2b0   :  { %856 = vmatprep.subr.bf16.mxu1 %v915_v3 }
 0x2b3   :  { %858 = vmatpush3.bf16.msra.mxu1 %v965_v7 }
 0x2b4   :  { %865 = vmatprep.subr.bf16.mxu1 %v915_v3 }
 0x381   :  { %v330_v25 = vpop.f32.mrb[2].mxu1 }
 0x382   :  { %v334_v26 = vadd.f32 %v680_v24, %v330_v25  ;;  %v778_v27 = vpop.f32.mrb[3].mxu1 }
 0x384   :  { %881 = vtanh.f32 %v334_v26 }
 0x38e   :  { %v882_v28 = vpop.eup %881 }
 0x38f   :  { %682 = vst.msk [vmem:[%s1091_s3 + $0x6] sm:$0x3] %vm99_vm2, %v882_v28  ;;  %788 = vmatmul.mubr.msk.f32.vlgmr.msra.gmra.mrb[4].mxu0 %vm23_vm1, %v882_v28 }
 0x390   :  { %861 = vmatpush3.bf16.msra.mxu0 %v954_v4  ;;  %809 = vmatprep.mubr.msk.f32.mxu0 %vm916_vm0, %v917_v6 }
 0x391   :  { %862 = vmatprep.subr.bf16.mxu0 %v915_v3 }
 0x394   :  { %864 = vmatpush3.bf16.msra.mxu0 %v965_v7 }
 0x462   :  { %v409_v30 = vpop.f32.mrb[4].mxu0 }
 0x463   :  { %v413_v31 = vadd.f32 %v683_v29, %v409_v30  ;;  %v789_v32 = vpop.f32.mrb[5].mxu0 }
 0x465   :  { %883 = vtanh.f32 %v413_v31 }
 0x46f   :  { %v884_v33 = vpop.eup %883 }
 0x470   :  { %685 = vst.msk [vmem:[%s1091_s3 + $0x8] sm:$0x3] %vm99_vm2, %v884_v33  ;;  %799 = vmatmul.mubr.msk.f32.vlgmr.msra.gmra.mrb[4].mxu1 %vm23_vm1, %v884_v33 }
 0x471   :  { %867 = vmatpush3.bf16.msra.mxu1 %v954_v4  ;;  %820 = vmatprep.mubr.msk.f32.mxu1 %vm916_vm0, %v917_v6 }
 0x472   :  { %868 = vmatprep.subr.bf16.mxu1 %v915_v3 }
 0x475   :  { %870 = vmatpush3.bf16.msra.mxu1 %v965_v7 }
 0x543   :  { %v488_v35 = vpop.f32.mrb[4].mxu1 }
 0x544   :  { %v492_v36 = vadd.f32 %v686_v34, %v488_v35  ;;  %v800_v37 = vpop.f32.mrb[5].mxu1 }
 0x546   :  { %885 = vtanh.f32 %v492_v36 }
 0x550   :  { %v886_v38 = vpop.eup %885 }
 0x551   :  { %688 = vst.msk [vmem:[%s1091_s3 + $0xa] sm:$0x3] %vm99_vm2, %v886_v38  ;;  %810 = vmatmul.mubr.msk.f32.vlgmr.msra.gmra.mrb[6].mxu0 %vm23_vm1, %v886_v38 }
 0x624   :  { %v567_v40 = vpop.f32.mrb[6].mxu0 }
 0x625   :  { %v571_v41 = vadd.f32 %v689_v39, %v567_v40  ;;  %v811_v42 = vpop.f32.mrb[7].mxu0 }
 0x627   :  { %887 = vtanh.f32 %v571_v41 }
 0x631   :  { %v888_v43 = vpop.eup %887 }
 0x632   :  { %691 = vst.msk [vmem:[%s1091_s3 + $0xc] sm:$0x3] %vm99_vm2, %v888_v43  ;;  %821 = vmatmul.mubr.msk.f32.vlgmr.msra.gmra.mrb[6].mxu1 %vm23_vm1, %v888_v43 }
 0x705   :  { %v646_v45 = vpop.f32.mrb[6].mxu1 }
 0x706   :  { %v650_v46 = vadd.f32 %v692_v44, %v646_v45  ;;  %v822_v47 = vpop.f32.mrb[7].mxu1 }
 0x708   :  { %889 = vtanh.f32 %v650_v46 }
 0x712   :  { %v890_v48 = vpop.eup %889 }
 0x713   :  { %694 = vst.msk [vmem:[%s1091_s3 + $0xe] sm:$0x3] %vm99_vm2, %v890_v48  ;;  %654 = vst.msk [vmem:[#allocation2] sm:$0x3] %vm99_vm2, %v890_v48 }
 0x714   :  { %902 = shalt.err (!%p899_p4)
}
 0x715   :  { %s903_s5 = scalar_lea.hbm %s1092_s4, 32 }
 0x716   :  { %p904_p5 = scmp.ne.s32.totalorder %s1092_s4, %s903_s5  ;;  %p907_p6 = scmp.lt.u32.totalorder %s903_s5, %s1092_s4 }
 0x718   :  { %p909_p7 = pnand %p907_p6, %p904_p5 }
 0x71a   :  { %912 = shalt.err (!%p909_p7)
}
 0x71b   :  { %666 = dma.vmem_to_hbm [thread:$0]  %s664_s26, 32, %s1092_s4, [#allocation3]  }
 0x71c   :  { %913 = dma.done.wait [#allocation3], 32  }
 0x71d   :  { %914 = vsyncadd [#allocation3], 4294967264 }
 0x71e   :  { %672 = vsyncpa [#allocation3], 1 }

</bundles_post_ra>
